<compile_context>
chip_gen: v5e
topology: v5e:2x2
jax: 0.10.0
libtpu: 0.0.40
codegen_flags: <defaults>
</compile_context>

<pallas_src>
import jax
import jax.numpy as jnp
from jax.experimental import pallas as pl
from jax.experimental.pallas import tpu as pltpu


def _round_up(x, m):
    return (x + m - 1) // m * m


def _largest_aligned_divisor(n, cap, align=128):
    """Largest multiple of `align` that divides n and is <= min(n, cap)."""
    best = align
    t = align
    limit = min(n, cap)
    while t <= limit:
        if n % t == 0:
            best = t
        t += align
    return best


def _sigmoid(x):
    # exp and (approx) reciprocal both go to the EUP slot -> frees the VALU
    # in the un-overlapped epilogue.
    return pl.reciprocal(1.0 + jnp.exp(-x), approx=True)


# --------------------------------------------------------------------------
# Kernels
# --------------------------------------------------------------------------
def _lstm_cell_kernel_fullk(xh_ref, w0_ref, w1_ref, w2_ref, w3_ref, b_ref,
                            c_ref, h_out_ref, c_out_ref):
    """Fast path: full K in one block, no reduction axis, no scratch."""
    xh = xh_ref[...]

    def gate(w_ref, row):
        acc = jnp.dot(xh, w_ref[...], preferred_element_type=jnp.float32)
        return acc + b_ref[row:row + 1, :]

    i_g = _sigmoid(gate(w0_ref, 0))
    f_g = _sigmoid(gate(w1_ref, 1))
    g_g = jnp.tanh(gate(w2_ref, 2))
    o_g = _sigmoid(gate(w3_ref, 3))

    c_prev = c_ref[...]
    new_c = f_g * c_prev + i_g * g_g
    new_h = o_g * jnp.tanh(new_c)
    c_out_ref[...] = new_c.astype(c_out_ref.dtype)
    h_out_ref[...] = new_h.astype(h_out_ref.dtype)


def _lstm_cell_kernel_tiledk(xh_ref, w0_ref, w1_ref, w2_ref, w3_ref, b_ref,
                             c_ref, h_out_ref, c_out_ref, acc_ref):
    """General path: K is the innermost ('arbitrary') reduction axis."""
    k = pl.program_id(2)
    tile = acc_ref.shape[1:]  # (tm, tn)

    @pl.when(k == 0)
    def _init():
        # Fold the bias into the accumulator init (no finalize add needed).
        for g in range(4):
            acc_ref[g, :, :] = jnp.broadcast_to(b_ref[g:g + 1, :], tile)

    xh = xh_ref[...]
    w_refs = (w0_ref, w1_ref, w2_ref, w3_ref)
    for g in range(4):
        acc_ref[g, :, :] += jnp.dot(xh, w_refs[g][...],
                                    preferred_element_type=jnp.float32)

    @pl.when(k == pl.num_programs(2) - 1)
    def _finalize():
        i_g = _sigmoid(acc_ref[0])
        f_g = _sigmoid(acc_ref[1])
        g_g = jnp.tanh(acc_ref[2])
        o_g = _sigmoid(acc_ref[3])
        c_prev = c_ref[...]
        new_c = f_g * c_prev + i_g * g_g
        new_h = o_g * jnp.tanh(new_c)
        c_out_ref[...] = new_c.astype(c_out_ref.dtype)
        h_out_ref[...] = new_h.astype(h_out_ref.dtype)


# --------------------------------------------------------------------------
# One-time parameter prepack (do this at init / once per sequence, NOT per step)
# --------------------------------------------------------------------------
def prepack_lstm_params(wx_t, wh_t, b):
    """Pack LSTMCell parameters for the Pallas kernel.

    wx_t: (I, 4H)  = input_layer.weight.T
    wh_t: (H, 4H)  = hidden_layer.weight.T   (no bias)
    b:    (4H,)    = input_layer.bias
    Returns a dict holding a gate-major bf16 (K_pad, 4*H_pad) weight
    (columns = [gate_i | gate_f | gate_g | gate_o], each H_pad wide, lane
    aligned) and an f32 (4, H_pad) bias, plus shape metadata.
    """
    I, four_h = wx_t.shape
    H = four_h // 4
    H_pad = _round_up(H, 128)
    K = I + H
    K_pad = _round_up(K, 128)

    w = jnp.concatenate([wx_t, wh_t], axis=0)                 # (K, 4H)
    w = w.reshape(K, 4, H)
    w = jnp.pad(w, ((0, K_pad - K), (0, 0), (0, H_pad - H)))
    w = w.reshape(K_pad, 4 * H_pad).astype(jnp.bfloat16)

    b2 = jnp.pad(b.reshape(4, H), ((0, 0), (0, H_pad - H))).astype(jnp.float32)

    return dict(w=w, b=b2, input_size=I, hidden_size=H,
                H_pad=H_pad, K=K, K_pad=K_pad)


# --------------------------------------------------------------------------
# Forward step
# --------------------------------------------------------------------------
def lstm_cell(x, h, c, packed, *, tm=None, tn=None, tk=None):
    """One LSTMCell forward step.

    x: (B, I), h/c: (B, H), packed = prepack_lstm_params(...)
    Returns (output, (new_h, new_c)) with output == new_h.
    """
    B, I = x.shape
    H = packed["hidden_size"]
    H_pad = packed["H_pad"]
    K = packed["K"]
    K_pad = packed["K_pad"]
    w = packed["w"]
    b2 = packed["b"]
    assert I == packed["input_size"] and h.shape[-1] == H and c.shape[-1] == H
    out_dtype = x.dtype
    out_isz = jnp.dtype(out_dtype).itemsize

    # --- generation-aware VMEM budget (leave headroom for Mosaic scratch) ---
    try:
        vmem_cap = int(getattr(pltpu.get_tpu_info(), "vmem_capacity_bytes",
                               64 << 20))
    except Exception:  # conservative fallback (safe on v7x's 64 MiB)
        vmem_cap = 64 << 20
    vmem_budget = int(0.8 * vmem_cap)

    # --- tile sizes ---------------------------------------------------------
    if tm is None:
        # multiple of 16 (bf16 sublane packing); cap 512 so typical batches
        # fit a single batch tile (avoids weight re-streaming in the tiled path)
        tm = min(_round_up(B, 16), 512)
    if tn is None:
        tn = _largest_aligned_divisor(H_pad, cap=512)
    CJ = H_pad // tn  # number of hidden-column tiles

    def vmem_fast(tm_):
        return (2 * tm_ * K_pad * 2            # xh tile (bf16, double-buffered)
                + 2 * 4 * K_pad * tn * 2       # four per-gate weight blocks
                + 2 * 8 * tn * 4               # bias
                + 2 * tm_ * tn * 4             # c_prev (f32)
                + 2 * 2 * tm_ * tn * out_isz)  # new_h / new_c

    def vmem_tiled(tm_, tk_):
        return (2 * tm_ * tk_ * 2
                + 2 * 4 * tk_ * tn * 2
                + 2 * 8 * tn * 4
                + 2 * tm_ * tn * 4
                + 2 * 2 * tm_ * tn * out_isz
                + 4 * tm_ * tn * 4)            # f32 accumulator scratch

    use_fast = (tk is None) and (vmem_fast(tm) <= vmem_budget)

    if not use_fast and tk is None:
        tk = None
        while True:
            for cap in (4096, 2048, 1024, 512, 256, 128):
                cand = _largest_aligned_divisor(K_pad, cap)
                if vmem_tiled(tm, cand) <= vmem_budget:
                    tk = cand
                    break
            if tk is not None or tm <= 16:
                break
            tm = max(16, tm // 2)
        if tk is None:
            tk = 128

    B_pad = _round_up(B, tm)

    # --- per-call activation prep (small: (B, I+H) and (B, H)) --------------
    xh = jnp.concatenate([x, h], axis=-1).astype(jnp.bfloat16)
    xh = jnp.pad(xh, ((0, B_pad - B), (0, K_pad - K)))
    c_p = jnp.pad(c.astype(jnp.float32), ((0, B_pad - B), (0, H_pad - H)))

    # --- build grid / specs --------------------------------------------------
    if use_fast:
        grid = (CJ, B_pad // tm)
        in_specs = [pl.BlockSpec((tm, K_pad), lambda j, i: (i, 0))]
        # per-gate weight blocks: constant along the batch axis -> VMEM-resident
        in_specs += [pl.BlockSpec((K_pad, tn),
                                  (lambda j, i, g=g: (0, g * CJ + j)))
                     for g in range(4)]
        in_specs += [pl.BlockSpec((4, tn), lambda j, i: (0, j)),        # bias
                     pl.BlockSpec((tm, tn), lambda j, i: (i, j))]       # c_prev
        out_specs = [pl.BlockSpec((tm, tn), lambda j, i: (i, j)),
                     pl.BlockSpec((tm, tn), lambda j, i: (i, j))]
        scratch = []
        kernel = _lstm_cell_kernel_fullk
        # columns outermost + parallel: on v7x the two TCs split the weight
        # stream by hidden columns instead of both streaming the full matrix.
        dims = ("parallel", "parallel")
    else:
        KT = K_pad // tk
        grid = (CJ, B_pad // tm, KT)
        in_specs = [pl.BlockSpec((tm, tk), lambda j, i, k: (i, k))]
        in_specs += [pl.BlockSpec((tk, tn),
                                  (lambda j, i, k, g=g: (k, g * CJ + j)))
                     for g in range(4)]
        in_specs += [pl.BlockSpec((4, tn), lambda j, i, k: (0, j)),
                     pl.BlockSpec((tm, tn), lambda j, i, k: (i, j))]
        out_specs = [pl.BlockSpec((tm, tn), lambda j, i, k: (i, j)),
                     pl.BlockSpec((tm, tn), lambda j, i, k: (i, j))]
        scratch = [pltpu.VMEM((4, tm, tn), jnp.float32)]
        kernel = _lstm_cell_kernel_tiledk
        dims = ("parallel", "parallel", "arbitrary")
        # NOTE: in this path the weight columns are re-DMA'd once per batch
        # tile (k resets when i changes); tm is capped at 512 so realistic
        # batches use a single batch tile.

    new_h_p, new_c_p = pl.pallas_call(
        kernel,
        out_shape=(
            jax.ShapeDtypeStruct((B_pad, H_pad), out_dtype),
            jax.ShapeDtypeStruct((B_pad, H_pad), out_dtype),
        ),
        grid_spec=pltpu.PrefetchScalarGridSpec(
            num_scalar_prefetch=0,
            grid=grid,
            in_specs=in_specs,
            out_specs=out_specs,
            scratch_shapes=scratch,
        ),
        compiler_params=pltpu.CompilerParams(
            dimension_semantics=dims,
            vmem_limit_bytes=vmem_budget,
        ),
    )(xh, w, w, w, w, b2, c_p)

    new_h = new_h_p[:B, :H]
    new_c = new_c_p[:B, :H]
    return new_h, (new_h, new_c)
    # TODO(synk): for sequence use, move the time loop inside the kernel
    # (time as an "arbitrary" grid axis, h/c in VMEM scratch, x and h as
    # separate inputs, input_output_aliases for the state) so weights are
    # streamed from HBM once per sequence instead of once per step.


# --------------------------------------------------------------------------
# Reference + self-test
# --------------------------------------------------------------------------
def reference_lstm_cell(x, h, c, wx_t, wh_t, b):
    gates = x @ wx_t + b + h @ wh_t
    i1, i2, i3, i4 = jnp.split(gates, 4, axis=-1)
    i = jax.nn.sigmoid(i1)
    f = jax.nn.sigmoid(i2)
    g = jnp.tanh(i3)
    o = jax.nn.sigmoid(i4)
    new_c = f * c + i * g
    new_h = o * jnp.tanh(new_c)
    return new_h, new_c


if __name__ == "__main__":
    key = jax.random.PRNGKey(0)
    batch, input_size, hidden_size = 8, 32, 32

    k_x, k_wx, k_bx, k_wh, k_h, k_c = jax.random.split(key, 6)

    # PyTorch-style parameters: input_layer = Linear(I, 4H),
    # hidden_layer = Linear(H, 4H, bias=False); weights stored (4H, in_feat).
    bound_x = 1.0 / (input_size ** 0.5)
    bound_h = 1.0 / (hidden_size ** 0.5)
    w_ih = jax.random.uniform(k_wx, (4 * hidden_size, input_size),
                              jnp.float32, -bound_x, bound_x)
    b_ih = jax.random.uniform(k_bx, (4 * hidden_size,),
                              jnp.float32, -bound_x, bound_x)
    w_hh = jax.random.uniform(k_wh, (4 * hidden_size, hidden_size),
                              jnp.float32, -bound_h, bound_h)

    x = jax.random.normal(k_x, (batch, input_size), jnp.float32)
    # non-zero state so the recurrent and cell paths are actually exercised
    h0 = 0.25 * jax.random.normal(k_h, (batch, hidden_size), jnp.float32)
    c0 = 0.25 * jax.random.normal(k_c, (batch, hidden_size), jnp.float32)

    # One-time prepack (hoisted out of the per-step call).
    packed = prepack_lstm_params(w_ih.T, w_hh.T, b_ih)
    jax.block_until_ready(packed["w"])

    output, (new_h, new_c) = lstm_cell(x, h0, c0, packed)
    jax.block_until_ready((output, new_h, new_c))

    ref_h, ref_c = reference_lstm_cell(x, h0, c0, w_ih.T, w_hh.T, b_ih)
    # bf16 matmul operands + EUP approx reciprocal -> loosened tolerance.
    assert jnp.allclose(new_h, ref_h, atol=2e-2, rtol=2e-2)
    assert jnp.allclose(new_c, ref_c, atol=2e-2, rtol=2e-2)
    assert jnp.allclose(output, new_h)

    print("KERNEL_OK")
</pallas_src>

<mosaic_0001>
module attributes {stable_mosaic.version = 11 : i64} {
  func.func @_lstm_cell_kernel_fullk(%arg0: i32, %arg1: i32, %arg2: memref<16x128xbf16, #tpu.memory_space<vmem>>, %arg3: memref<128x128xbf16, #tpu.memory_space<vmem>>, %arg4: memref<128x128xbf16, #tpu.memory_space<vmem>>, %arg5: memref<128x128xbf16, #tpu.memory_space<vmem>>, %arg6: memref<128x128xbf16, #tpu.memory_space<vmem>>, %arg7: memref<4x128xf32, #tpu.memory_space<vmem>>, %arg8: memref<16x128xf32, #tpu.memory_space<vmem>>, %arg9: memref<16x128xf32, #tpu.memory_space<vmem>>, %arg10: memref<16x128xf32, #tpu.memory_space<vmem>>) attributes {dimension_semantics = [#tpu.dimension_semantics<parallel>, #tpu.dimension_semantics<parallel>], iteration_bounds = array<i64: 1, 1>, scalar_prefetch = 0 : i64, scratch_operands = 0 : i64, tpu.core_type = #tpu.core_type<tc>, window_params = [{transform_indices = @transform_0, window_bounds = array<i64: 16, 128>}, {transform_indices = @transform_1, window_bounds = array<i64: 128, 128>}, {transform_indices = @transform_2, window_bounds = array<i64: 128, 128>}, {transform_indices = @transform_3, window_bounds = array<i64: 128, 128>}, {transform_indices = @transform_4, window_bounds = array<i64: 128, 128>}, {transform_indices = @transform_5, window_bounds = array<i64: 4, 128>}, {transform_indices = @transform_6, window_bounds = array<i64: 16, 128>}, {transform_indices = @transform_7, window_bounds = array<i64: 16, 128>}, {transform_indices = @transform_8, window_bounds = array<i64: 16, 128>}]} {
    %c0 = arith.constant 0 : index
    %c0_0 = arith.constant 0 : index
    %0 = vector.load %arg2[%c0, %c0_0] : memref<16x128xbf16, #tpu.memory_space<vmem>>, vector<16x128xbf16>
    %c0_1 = arith.constant 0 : index
    %c0_2 = arith.constant 0 : index
    %1 = vector.load %arg3[%c0_1, %c0_2] : memref<128x128xbf16, #tpu.memory_space<vmem>>, vector<128x128xbf16>
    %cst = arith.constant dense<0.000000e+00> : vector<16x128xf32>
    %2 = tpu.matmul %0, %1, %cst {dimension_numbers = #tpu.dot_dimension_numbers<[1], [0], [0], [1], [0, 0, 1, 1], [], []>} : vector<16x128xbf16>, vector<128x128xbf16>, vector<16x128xf32> -> vector<16x128xf32>
    %c0_3 = arith.constant 0 : index
    %c0_4 = arith.constant 0 : index
    %3 = vector.load %arg7[%c0_3, %c0_4] : memref<4x128xf32, #tpu.memory_space<vmem>>, vector<1x128xf32>
    %4 = vector.broadcast %3 : vector<1x128xf32> to vector<16x128xf32>
    %5 = arith.addf %2, %4 : vector<16x128xf32>
    %cst_5 = arith.constant 0.000000e+00 : f32
    %6 = vector.broadcast %cst_5 : f32 to vector<16x128xf32>
    %7 = arith.subf %6, %5 : vector<16x128xf32>
    %8 = math.exp %7 : vector<16x128xf32>
    %cst_6 = arith.constant 1.000000e+00 : f32
    %9 = vector.broadcast %cst_6 : f32 to vector<16x128xf32>
    %10 = arith.addf %9, %8 : vector<16x128xf32>
    %11 = tpu.reciprocal %10 {approx = true} : vector<16x128xf32> -> vector<16x128xf32>
    %c0_7 = arith.constant 0 : index
    %c0_8 = arith.constant 0 : index
    %12 = vector.load %arg4[%c0_7, %c0_8] : memref<128x128xbf16, #tpu.memory_space<vmem>>, vector<128x128xbf16>
    %cst_9 = arith.constant dense<0.000000e+00> : vector<16x128xf32>
    %13 = tpu.matmul %0, %12, %cst_9 {dimension_numbers = #tpu.dot_dimension_numbers<[1], [0], [0], [1], [0, 0, 1, 1], [], []>} : vector<16x128xbf16>, vector<128x128xbf16>, vector<16x128xf32> -> vector<16x128xf32>
    %c1 = arith.constant 1 : index
    %c0_10 = arith.constant 0 : index
    %14 = vector.load %arg7[%c1, %c0_10] : memref<4x128xf32, #tpu.memory_space<vmem>>, vector<1x128xf32>
    %15 = vector.broadcast %14 : vector<1x128xf32> to vector<16x128xf32>
    %16 = arith.addf %13, %15 : vector<16x128xf32>
    %cst_11 = arith.constant 0.000000e+00 : f32
    %17 = vector.broadcast %cst_11 : f32 to vector<16x128xf32>
    %18 = arith.subf %17, %16 : vector<16x128xf32>
    %19 = math.exp %18 : vector<16x128xf32>
    %cst_12 = arith.constant 1.000000e+00 : f32
    %20 = vector.broadcast %cst_12 : f32 to vector<16x128xf32>
    %21 = arith.addf %20, %19 : vector<16x128xf32>
    %22 = tpu.reciprocal %21 {approx = true} : vector<16x128xf32> -> vector<16x128xf32>
    %c0_13 = arith.constant 0 : index
    %c0_14 = arith.constant 0 : index
    %23 = vector.load %arg5[%c0_13, %c0_14] : memref<128x128xbf16, #tpu.memory_space<vmem>>, vector<128x128xbf16>
    %cst_15 = arith.constant dense<0.000000e+00> : vector<16x128xf32>
    %24 = tpu.matmul %0, %23, %cst_15 {dimension_numbers = #tpu.dot_dimension_numbers<[1], [0], [0], [1], [0, 0, 1, 1], [], []>} : vector<16x128xbf16>, vector<128x128xbf16>, vector<16x128xf32> -> vector<16x128xf32>
    %c2 = arith.constant 2 : index
    %c0_16 = arith.constant 0 : index
    %25 = vector.load %arg7[%c2, %c0_16] : memref<4x128xf32, #tpu.memory_space<vmem>>, vector<1x128xf32>
    %26 = vector.broadcast %25 : vector<1x128xf32> to vector<16x128xf32>
    %27 = arith.addf %24, %26 : vector<16x128xf32>
    %28 = math.tanh %27 : vector<16x128xf32>
    %c0_17 = arith.constant 0 : index
    %c0_18 = arith.constant 0 : index
    %29 = vector.load %arg6[%c0_17, %c0_18] : memref<128x128xbf16, #tpu.memory_space<vmem>>, vector<128x128xbf16>
    %cst_19 = arith.constant dense<0.000000e+00> : vector<16x128xf32>
    %30 = tpu.matmul %0, %29, %cst_19 {dimension_numbers = #tpu.dot_dimension_numbers<[1], [0], [0], [1], [0, 0, 1, 1], [], []>} : vector<16x128xbf16>, vector<128x128xbf16>, vector<16x128xf32> -> vector<16x128xf32>
    %c3 = arith.constant 3 : index
    %c0_20 = arith.constant 0 : index
    %31 = vector.load %arg7[%c3, %c0_20] : memref<4x128xf32, #tpu.memory_space<vmem>>, vector<1x128xf32>
    %32 = vector.broadcast %31 : vector<1x128xf32> to vector<16x128xf32>
    %33 = arith.addf %30, %32 : vector<16x128xf32>
    %cst_21 = arith.constant 0.000000e+00 : f32
    %34 = vector.broadcast %cst_21 : f32 to vector<16x128xf32>
    %35 = arith.subf %34, %33 : vector<16x128xf32>
    %36 = math.exp %35 : vector<16x128xf32>
    %cst_22 = arith.constant 1.000000e+00 : f32
    %37 = vector.broadcast %cst_22 : f32 to vector<16x128xf32>
    %38 = arith.addf %37, %36 : vector<16x128xf32>
    %39 = tpu.reciprocal %38 {approx = true} : vector<16x128xf32> -> vector<16x128xf32>
    %c0_23 = arith.constant 0 : index
    %c0_24 = arith.constant 0 : index
    %40 = vector.load %arg8[%c0_23, %c0_24] : memref<16x128xf32, #tpu.memory_space<vmem>>, vector<16x128xf32>
    %41 = arith.mulf %22, %40 : vector<16x128xf32>
    %42 = arith.mulf %11, %28 : vector<16x128xf32>
    %43 = arith.addf %41, %42 : vector<16x128xf32>
    %44 = math.tanh %43 : vector<16x128xf32>
    %45 = arith.mulf %39, %44 : vector<16x128xf32>
    %c0_25 = arith.constant 0 : index
    %c0_26 = arith.constant 0 : index
    %46 = vector.load %arg10[%c0_25, %c0_26] : memref<16x128xf32, #tpu.memory_space<vmem>>, vector<16x128xf32>
    tpu.vector_store %arg10[%c0_25, %c0_26], %43 {strides = array<i32>} : memref<16x128xf32, #tpu.memory_space<vmem>>, vector<16x128xf32>,
    %c0_27 = arith.constant 0 : index
    %c0_28 = arith.constant 0 : index
    %47 = vector.load %arg9[%c0_27, %c0_28] : memref<16x128xf32, #tpu.memory_space<vmem>>, vector<16x128xf32>
    tpu.vector_store %arg9[%c0_27, %c0_28], %45 {strides = array<i32>} : memref<16x128xf32, #tpu.memory_space<vmem>>, vector<16x128xf32>,
    return
  }
  func.func @transform_0(%arg0: i32, %arg1: i32) -> (i32, i32) {
    %c0_i32 = arith.constant 0 : i32
    %c0_i32_0 = arith.constant 0 : i32
    return %arg1, %c0_i32 : i32, i32
  }
  func.func @transform_1(%arg0: i32, %arg1: i32) -> (i32, i32) {
    %c0_i32 = arith.constant 0 : i32
    %0 = arith.addi %c0_i32, %arg0 : i32
    %c0_i32_0 = arith.constant 0 : i32
    %c0_i32_1 = arith.constant 0 : i32
    return %c0_i32_0, %0 : i32, i32
  }
  func.func @transform_2(%arg0: i32, %arg1: i32) -> (i32, i32) {
    %c1_i32 = arith.constant 1 : i32
    %0 = arith.addi %c1_i32, %arg0 : i32
    %c0_i32 = arith.constant 0 : i32
    %c0_i32_0 = arith.constant 0 : i32
    return %c0_i32, %0 : i32, i32
  }
  func.func @transform_3(%arg0: i32, %arg1: i32) -> (i32, i32) {
    %c2_i32 = arith.constant 2 : i32
    %0 = arith.addi %c2_i32, %arg0 : i32
    %c0_i32 = arith.constant 0 : i32
    %c0_i32_0 = arith.constant 0 : i32
    return %c0_i32, %0 : i32, i32
  }
  func.func @transform_4(%arg0: i32, %arg1: i32) -> (i32, i32) {
    %c3_i32 = arith.constant 3 : i32
    %0 = arith.addi %c3_i32, %arg0 : i32
    %c0_i32 = arith.constant 0 : i32
    %c0_i32_0 = arith.constant 0 : i32
    return %c0_i32, %0 : i32, i32
  }
  func.func @transform_5(%arg0: i32, %arg1: i32) -> (i32, i32) {
    %c0_i32 = arith.constant 0 : i32
    %c0_i32_0 = arith.constant 0 : i32
    return %c0_i32, %arg0 : i32, i32
  }
  func.func @transform_6(%arg0: i32, %arg1: i32) -> (i32, i32) {
    %c0_i32 = arith.constant 0 : i32
    return %arg1, %arg0 : i32, i32
  }
  func.func @transform_7(%arg0: i32, %arg1: i32) -> (i32, i32) {
    %c0_i32 = arith.constant 0 : i32
    return %arg1, %arg0 : i32, i32
  }
  func.func @transform_8(%arg0: i32, %arg1: i32) -> (i32, i32) {
    %c0_i32 = arith.constant 0 : i32
    return %arg1, %arg0 : i32, i32
  }
}

</mosaic_0001>

<bundles_post_ra>
// kernel: tpu_custom_call.1
= control target key start
LH: loop header
LB: loop body
LE: loop exit
PB: predicated region body
PF: predicated region fallthrough
CT: control target
= control target key end

     0   :  { %14 = vsyncpa [#allocation3], 0  ;;  %s1091_s0 = inlined_call_operand.hbm [shape: bf16[16,128], index: 0, kind: input, shape index: {}]   ;;  %s1092_s1 = inlined_call_operand.hbm [shape: bf16[128,512], index: 1, kind: input, shape index: {}]   ;;  %s1093_s2 = inlined_call_operand.hbm [shape: bf16[128,512], index: 2, kind: input, shape index: {}]   ;;  %s1094_s3 = inlined_call_operand.hbm [shape: bf16[128,512], index: 3, kind: input, shape index: {}]   ;;  %s1095_s4 = inlined_call_operand.hbm [shape: bf16[128,512], index: 4, kind: input, shape index: {}]   ;;  %s1096_s5 = inlined_call_operand.vmem [shape: f32[4,128], index: 5, kind: input, shape index: {}]   ;;  %s1097_s6 = inlined_call_operand.hbm [shape: f32[16,128], index: 6, kind: input, shape index: {}]   ;;  %s1098_s7 = inlined_call_operand.hbm [shape: f32[16,128], index: 7, kind: output, shape index: {0}]   ;;  %s1099_s8 = inlined_call_operand.hbm [shape: f32[16,128], index: 8, kind: output, shape index: {1}]  }
   0x1   :  { %15 = vsyncpa [#allocation6], 0 }
   0x2   :  { %16 = vsyncpa [#allocation9], 0 }
   0x3   :  { %17 = vsyncpa [#allocation12], 0 }
   0x4   :  { %18 = vsyncpa [#allocation4], 0 }
   0x5   :  { %19 = vsyncpa [#allocation15], 0  ;;  %s37_s29 = sshll.u32 %s1092_s1, 4  ;;  %s973_s30 = smov [#allocation5]   ;;  %s38_s29 = int_to_ptr.hbm [resolvable:$true] %s37_s29 }
   0x6   :  { %s39_s9 = sshll.u32 %s973_s30, 4  ;;  %s974_s10 = smov 256   ;;  %s40_s9 = int_to_ptr.vmem [resolvable:$true] %s39_s9 }
   0x7   :  { %s975_s11 = smov 64   ;;  %s976_s12 = smov 4  }
   0x8   :  { %45 = dma.hbm_to_vmem [thread:$0]  %s38_s29, 1024, %s40_s9, [#allocation6], %s974_s10, %s975_s11, %s976_s12  }
   0x9   :  { %s553_s15 = scalar_lea.hbm %s1094_s3, 8  ;;  %s977_s17 = smov [#allocation8]  }
   0xa   :  { %s69_s16 = sshll.u32 %s553_s15, 4  ;;  %s71_s18 = sshll.u32 %s977_s17, 4  ;;  %s70_s16 = int_to_ptr.hbm [resolvable:$true] %s69_s16  ;;  %s72_s18 = int_to_ptr.vmem [resolvable:$true] %s71_s18 }
   0xb   :  { %77 = dma.hbm_to_vmem [thread:$0]  %s70_s16, 1024, %s72_s18, [#allocation9], %s974_s10, %s975_s11, %s976_s12  }
   0xc   :  { %s24_s20 = sshll.u32 %s1091_s0, 4  ;;  %s978_s21 = smov [#allocation2]   ;;  %s25_s20 = int_to_ptr.hbm [resolvable:$true] %s24_s20 }
   0xd   :  { %s26_s22 = sshll.u32 %s978_s21, 4  ;;  %s552_s3 = scalar_lea.hbm %s1093_s2, 4  ;;  %s27_s22 = int_to_ptr.vmem [resolvable:$true] %s26_s22 }
   0xe   :  { %32 = dma.hbm_to_vmem [thread:$0]  %s25_s20, 128, %s27_s22, [#allocation3], %s975_s11, %s975_s11, %s976_s12  }
   0xf   :  { %s53_s25 = sshll.u32 %s552_s3, 4  ;;  %s979_s26 = smov [#allocation7]   ;;  %s54_s25 = int_to_ptr.hbm [resolvable:$true] %s53_s25 }
  0x10   :  { %s55_s27 = sshll.u32 %s979_s26, 4  ;;  %s554_s0 = scalar_lea.hbm %s1095_s4, 12  ;;  %s56_s27 = int_to_ptr.vmem [resolvable:$true] %s55_s27 }
  0x11   :  { %61 = dma.hbm_to_vmem [thread:$0]  %s54_s25, 1024, %s56_s27, [#allocation6], %s974_s10, %s975_s11, %s976_s12  }
  0x12   :  { %s85_s30 = sshll.u32 %s554_s0, 4  ;;  %s980_s2 = smov [#allocation10]   ;;  %s86_s30 = int_to_ptr.hbm [resolvable:$true] %s85_s30 }
  0x13   :  { %s87_s9 = sshll.u32 %s980_s2, 4  ;;  %s100_s15 = sshll.u32 %s1097_s6, 4  ;;  %s88_s9 = int_to_ptr.vmem [resolvable:$true] %s87_s9  ;;  %s101_s15 = int_to_ptr.hbm [resolvable:$true] %s100_s15 }
  0x14   :  { %93 = dma.hbm_to_vmem [thread:$0]  %s86_s30, 1024, %s88_s9, [#allocation9], %s974_s10, %s975_s11, %s976_s12  }
  0x15   :  { %s981_s16 = smov [#allocation11]   ;;  %s982_s17 = smov 128  }
  0x16   :  { %s102_s4 = sshll.u32 %s981_s16, 4  ;;  %s983_s18 = smov 8   ;;  %s103_s4 = int_to_ptr.vmem [resolvable:$true] %s102_s4 }
  0x17   :  { %108 = dma.hbm_to_vmem [thread:$0]  %s101_s15, 256, %s103_s4, [#allocation12], %s982_s17, %s982_s17, %s983_s18  }
  0x18   :  { %961 = dma.done.wait [#allocation3], 128  }
  0x19   :  { %962 = vsyncadd [#allocation3], 4294967168 }
  0x1a   :  { %963 = dma.done.wait [#allocation6], 2048  }
  0x1b   :  { %964 = vsyncadd [#allocation6], 4294965248 }
  0x1c   :  { %965 = dma.done.wait [#allocation9], 2048  }
  0x1d   :  { %966 = vsyncadd [#allocation9], 4294965248 }
  0x1e   :  { %967 = dma.done.wait [#allocation12], 256  }
  0x1f   :  { %968 = vsyncadd [#allocation12], 4294967040  ;;  %v695_v0 = vld [vmem:[#allocation5 + $0x38] sm:$0xff]  ;;  %v694_v4 = vld [vmem:[#allocation5 + $0x30] sm:$0xff]  ;;  %s531_s3 = sshll.u32 %s1099_s8, 4  ;;  %s985_s25 = smov [#allocation13]   ;;  %s532_s3 = int_to_ptr.hbm [resolvable:$true] %s531_s3 }
  0x20   :  { %v703_v1 = vld [vmem:[#allocation7 + $0x38] sm:$0xff]  ;;  %210 = vmatpush.bf16.msra.mxu0 %v695_v0  ;;  %v702_v5 = vld [vmem:[#allocation7 + $0x30] sm:$0xff]  ;;  %v693_v8 = vld [vmem:[#allocation5 + $0x28] sm:$0xff]  ;;  %s516_s26 = sshll.u32 %s985_s25, 4  ;;  %s518_s8 = sshll.u32 %s1098_s7, 4  ;;  %s517_s26 = int_to_ptr.vmem [resolvable:$true] %s516_s26  ;;  %s519_s8 = int_to_ptr.hbm [resolvable:$true] %s518_s8 }
  0x21   :  { %v711_v2 = vld [vmem:[#allocation8 + $0x38] sm:$0xff]  ;;  %300 = vmatpush.bf16.msra.mxu1 %v703_v1  ;;  %v710_v6 = vld [vmem:[#allocation8 + $0x30] sm:$0xff]  ;;  %v701_v9 = vld [vmem:[#allocation7 + $0x28] sm:$0xff] }
  0x22   :  { %v719_v3 = vld [vmem:[#allocation10 + $0x38] sm:$0xff]  ;;  %390 = vmatpush.bf16.msra.mxu2 %v711_v2  ;;  %v718_v7 = vld [vmem:[#allocation10 + $0x30] sm:$0xff]  ;;  %v709_v10 = vld [vmem:[#allocation8 + $0x28] sm:$0xff] }
  0x23   :  { %472 = vmatpush.bf16.msra.mxu3 %v719_v3  ;;  %v717_v11 = vld [vmem:[#allocation10 + $0x28] sm:$0xff]  ;;  %v692_v12 = vld [vmem:[#allocation5 + $0x20] sm:$0xff]  ;;  %v691_v16 = vld [vmem:[#allocation5 + $0x18] sm:$0xff] }
  0x24   :  { %211 = vmatpush.bf16.msra.mxu0 %v694_v4  ;;  %v700_v13 = vld [vmem:[#allocation7 + $0x20] sm:$0xff]  ;;  %v699_v17 = vld [vmem:[#allocation7 + $0x18] sm:$0xff]  ;;  %v690_v20 = vld [vmem:[#allocation5 + $0x10] sm:$0xff] }
  0x25   :  { %301 = vmatpush.bf16.msra.mxu1 %v702_v5  ;;  %v708_v14 = vld [vmem:[#allocation8 + $0x20] sm:$0xff]  ;;  %v707_v18 = vld [vmem:[#allocation8 + $0x18] sm:$0xff]  ;;  %v698_v21 = vld [vmem:[#allocation7 + $0x10] sm:$0xff] }
  0x26   :  { %391 = vmatpush.bf16.msra.mxu2 %v710_v6  ;;  %v716_v15 = vld [vmem:[#allocation10 + $0x20] sm:$0xff]  ;;  %v715_v19 = vld [vmem:[#allocation10 + $0x18] sm:$0xff]  ;;  %v706_v22 = vld [vmem:[#allocation8 + $0x10] sm:$0xff] }
  0x27   :  { %473 = vmatpush.bf16.msra.mxu3 %v718_v7  ;;  %v714_v23 = vld [vmem:[#allocation10 + $0x10] sm:$0xff]  ;;  %v689_v24 = vld [vmem:[#allocation5 + $0x8] sm:$0xff]  ;;  %v688_v28 = vld [vmem:[#allocation5] sm:$0xff] }
  0x28   :  { %212 = vmatpush.bf16.msra.mxu0 %v693_v8  ;;  %v697_v25 = vld [vmem:[#allocation7 + $0x8] sm:$0xff]  ;;  %v696_v29 = vld [vmem:[#allocation7] sm:$0xff]  ;;  %v687_v32 = vld [vmem:[#allocation2] sm:$0xff] }
  0x29   :  { %302 = vmatpush.bf16.msra.mxu1 %v701_v9  ;;  %v705_v26 = vld [vmem:[#allocation8 + $0x8] sm:$0xff]  ;;  %v704_v30 = vld [vmem:[#allocation8] sm:$0xff]  ;;  %v733_v33 = vld [vmem:[%s1096_s5] ss:$0 sm:$0xff] }
  0x2a   :  { %392 = vmatpush.bf16.msra.mxu2 %v709_v10  ;;  %v713_v27 = vld [vmem:[#allocation10 + $0x8] sm:$0xff]  ;;  %v712_v31 = vld [vmem:[#allocation10] sm:$0xff]  ;;  %v734_v34 = vld [vmem:[%s1096_s5 + $0x1] ss:$0 sm:$0xff] }
  0x2b   :  { %474 = vmatpush.bf16.msra.mxu3 %v717_v11  ;;  %v736_v41 = vld [vmem:[%s1096_s5 + $0x3] ss:$0 sm:$0xff]  ;;  %v735_v44 = vld [vmem:[%s1096_s5 + $0x2] ss:$0 sm:$0xff]  ;;  %v496_v7 = vld [vmem:[#allocation11] sm:$0xff]  ;;  %s984_s5 = smov [#allocation14]  }
  0x2c   :  { %213 = vmatpush.bf16.msra.mxu0 %v692_v12  ;;  %s529_s22 = sshll.u32 %s984_s5, 4  ;;  %s530_s22 = int_to_ptr.vmem [resolvable:$true] %s529_s22 }
  0x2d   :  { %303 = vmatpush.bf16.msra.mxu1 %v700_v13 }
  0x2e   :  { %393 = vmatpush.bf16.msra.mxu2 %v708_v14 }
  0x2f   :  { %475 = vmatpush.bf16.msra.mxu3 %v716_v15 }
  0x30   :  { %214 = vmatpush.bf16.msra.mxu0 %v691_v16 }
  0x31   :  { %304 = vmatpush.bf16.msra.mxu1 %v699_v17 }
  0x32   :  { %394 = vmatpush.bf16.msra.mxu2 %v707_v18 }
  0x33   :  { %476 = vmatpush.bf16.msra.mxu3 %v715_v19 }
  0x34   :  { %215 = vmatpush.bf16.msra.mxu0 %v690_v20 }
  0x35   :  { %305 = vmatpush.bf16.msra.mxu1 %v698_v21  ;;  %v497_v21 = vld [vmem:[#allocation11 + $0x8] sm:$0xff] }
  0x36   :  { %395 = vmatpush.bf16.msra.mxu2 %v706_v22 }
  0x37   :  { %477 = vmatpush.bf16.msra.mxu3 %v714_v23 }
  0x38   :  { %216 = vmatpush.bf16.msra.mxu0 %v689_v24 }
  0x39   :  { %306 = vmatpush.bf16.msra.mxu1 %v697_v25 }
  0x3a   :  { %396 = vmatpush.bf16.msra.mxu2 %v705_v26 }
  0x3b   :  { %478 = vmatpush.bf16.msra.mxu3 %v713_v27 }
  0x3c   :  { %217 = vmatpush.bf16.msra.mxu0 %v688_v28 }
  0x3d   :  { %307 = vmatpush.bf16.msra.mxu1 %v696_v29 }
  0x3e   :  { %397 = vmatpush.bf16.msra.mxu2 %v704_v30 }
  0x3f   :  { %479 = vmatpush.bf16.msra.mxu3 %v712_v31  ;;  %218 = vmatmul.bf16.vlgmr.msra.gmra.mxu0 %v687_v32 }
  0x40   :  { %308 = vmatmul.bf16.vlgmr.msra.gmra.mxu1 %v687_v32 }
  0x41   :  { %398 = vmatmul.bf16.vlgmr.msra.gmra.mxu2 %v687_v32 }
  0x42   :  { %480 = vmatmul.bf16.vlgmr.msra.gmra.mxu3 %v687_v32 }
  0xbc   :  { %v219_v35 = vpop.f32.mrf.mxu0 }
  0xbd   :  { %v309_v36 = vpop.f32.mrf.mxu1  ;;  %v220_v37 = vadd.f32 %v733_v33, %v219_v35 }
  0xbe   :  { %v310_v38 = vadd.f32 %v734_v34, %v309_v36 }
  0xbf   :  { %v224_v39 = vsub.f32 0.0, %v220_v37 }
  0xc0   :  { %v314_v40 = vsub.f32 0.0, %v310_v38 }
  0xc1   :  { %v226_v42 = vmul.f32 1.442695, %v224_v39 }
  0xc2   :  { %v316_v43 = vmul.f32 1.442695, %v314_v40 }
  0xc3   :  { %737 = vpow2.f32 %v226_v42 }
  0xc4   :  { %v399_v45 = vpop.f32.mrf.mxu2  ;;  %739 = vpow2.f32 %v316_v43  ;;  %v221_v48 = vpop.f32.mrf.mxu0 }
  0xc5   :  { %v481_v46 = vpop.f32.mrf.mxu3  ;;  %v311_v49 = vpop.f32.mrf.mxu1  ;;  %v400_v50 = vadd.f32 %v735_v44, %v399_v45  ;;  %v222_v51 = vadd.f32 %v733_v33, %v221_v48 }
  0xc6   :  { %v482_v47 = vadd.f32 %v736_v41, %v481_v46  ;;  %v312_v52 = vadd.f32 %v734_v34, %v311_v49 }
  0xc7   :  { %v225_v54 = vsub.f32 0.0, %v222_v51  ;;  %741 = vtanh.f32 %v400_v50 }
  0xc8   :  { %v486_v53 = vsub.f32 0.0, %v482_v47  ;;  %v315_v55 = vsub.f32 0.0, %v312_v52 }
  0xc9   :  { %v738_v57 = vpop.eup %737  ;;  %v228_v58 = vmul.f32 1.442695, %v225_v54 }
  0xca   :  { %v488_v56 = vmul.f32 1.442695, %v486_v53  ;;  %v740_v59 = vpop.eup %739  ;;  %v230_v60 = vadd.f32 1.0, %v738_v57  ;;  %v318_v61 = vmul.f32 1.442695, %v315_v55 }
  0xcb   :  { %v320_v62 = vadd.f32 1.0, %v740_v59 }
  0xcc   :  { %743 = vpow2.f32 %v488_v56  ;;  %v401_v1 = vpop.f32.mrf.mxu2 }
  0xcd   :  { %745 = vpow2.f32 %v228_v58  ;;  %v483_v63 = vpop.f32.mrf.mxu3  ;;  %v742_v3 = vpop.eup %741  ;;  %v402_v8 = vadd.f32 %v735_v44, %v401_v1 }
  0xce   :  { %747 = vrcp.f32 %v230_v60  ;;  %v484_v0 = vadd.f32 %v736_v41, %v483_v63 }
  0xcf   :  { %749 = vrcp.f32 %v320_v62 }
  0xd0   :  { %751 = vpow2.f32 %v318_v61  ;;  %v487_v2 = vsub.f32 0.0, %v484_v0 }
  0xd2   :  { %v744_v4 = vpop.eup %743  ;;  %v490_v5 = vmul.f32 1.442695, %v487_v2 }
  0xd3   :  { %v746_v6 = vpop.eup %745  ;;  %v492_v10 = vadd.f32 1.0, %v744_v4 }
  0xd4   :  { %v748_v9 = vpop.eup %747  ;;  %v231_v11 = vadd.f32 1.0, %v746_v6  ;;  %753 = vpow2.f32 %v490_v5 }
  0xd5   :  { %v750_v12 = vpop.eup %749  ;;  %v500_v13 = vmul.f32 %v748_v9, %v742_v3 }
  0xd6   :  { %v752_v14 = vpop.eup %751  ;;  %v498_v15 = vmul.f32 %v750_v12, %v496_v7  ;;  %755 = vrcp.f32 %v231_v11 }
  0xd7   :  { %v321_v16 = vadd.f32 1.0, %v752_v14  ;;  %757 = vtanh.f32 %v402_v8 }
  0xd8   :  { %v502_v17 = vadd.f32 %v500_v13, %v498_v15  ;;  %759 = vrcp.f32 %v492_v10 }
  0xd9   :  { %761 = vrcp.f32 %v321_v16 }
  0xda   :  { %763 = vtanh.f32 %v502_v17  ;;  %508 = vst [vmem:[#allocation14] sm:$0xff] %v502_v17  ;;  %v754_v18 = vpop.eup %753 }
  0xdb   :  { %v493_v25 = vadd.f32 1.0, %v754_v18 }
  0xdc   :  { %v756_v19 = vpop.eup %755 }
  0xdd   :  { %v758_v20 = vpop.eup %757  ;;  %765 = vrcp.f32 %v493_v25 }
  0xde   :  { %v760_v22 = vpop.eup %759  ;;  %v501_v23 = vmul.f32 %v758_v20, %v756_v19 }
  0xdf   :  { %v762_v24 = vpop.eup %761 }
  0xe0   :  { %v764_v26 = vpop.eup %763  ;;  %v499_v27 = vmul.f32 %v762_v24, %v497_v21 }
  0xe1   :  { %v506_v28 = vmul.f32 %v764_v26, %v760_v22 }
  0xe2   :  { %v503_v29 = vadd.f32 %v501_v23, %v499_v27 }
  0xe3   :  { %510 = vst [vmem:[#allocation13] sm:$0xff] %v506_v28  ;;  %v766_v30 = vpop.eup %765 }
  0xe4   :  { %767 = vtanh.f32 %v503_v29  ;;  %509 = vst [vmem:[#allocation14 + $0x8] sm:$0xff] %v503_v29 }
  0xe5   :  { %537 = dma.vmem_to_hbm [thread:$0]  %s530_s22, 256, %s532_s3, [#allocation15], %s982_s17, %s982_s17, %s983_s18  }
  0xea   :  { %v768_v31 = vpop.eup %767 }
  0xeb   :  { %v507_v32 = vmul.f32 %v768_v31, %v766_v30 }
  0xed   :  { %511 = vst [vmem:[#allocation13 + $0x8] sm:$0xff] %v507_v32 }
  0xee   :  { %524 = dma.vmem_to_hbm [thread:$0]  %s517_s26, 256, %s519_s8, [#allocation4], %s982_s17, %s982_s17, %s983_s18  }
  0xef   :  { %969 = dma.done.wait [#allocation4], 256  }
  0xf0   :  { %970 = vsyncadd [#allocation4], 4294967040 }
  0xf1   :  { %971 = dma.done.wait [#allocation15], 256  }
  0xf2   :  { %972 = vsyncadd [#allocation15], 4294967040 }
  0xf3   :  { %546 = vsyncpa [#allocation3], 1 }
  0xf4   :  { %547 = vsyncpa [#allocation6], 1 }
  0xf5   :  { %548 = vsyncpa [#allocation9], 1 }
  0xf6   :  { %549 = vsyncpa [#allocation12], 1 }
  0xf7   :  { %550 = vsyncpa [#allocation4], 1 }
  0xf8   :  { %551 = vsyncpa [#allocation15], 1 }

</bundles_post_ra>
